<compile_context>
chip_gen: v7x
topology: tpu7x:2x2x1
jax: 0.10.0
libtpu: 0.0.40
codegen_flags: <defaults>
</compile_context>

<pallas_src>
import jax
import jax.numpy as jnp
from jax.experimental import pallas as pl
from jax.experimental.pallas import tpu as pltpu

_LANES = 128
_SUBLANES = 8


def _nonneg_sigmoid_kernel(gamma_ref, x_ref, o_ref):
    # gamma lives in SMEM as a (1, 1) f32 scalar.
    g = gamma_ref[0, 0]
    # Compute in f32 regardless of input dtype (v5e has no bf16 VPU/EUP path).
    x = x_ref[...].astype(jnp.float32)
    # 2 / (1 + exp(-g*x)) - 1 == tanh(0.5 * g * x): one EUP op, no divide.
    o_ref[...] = jnp.tanh((0.5 * g) * x).astype(o_ref.dtype)


def nonnegative_sigmoid(x, gamma, *, tile_rows=2048):
    """Applies 2/(1+exp(-gamma*x)) - 1 elementwise via a Pallas TPU kernel."""
    orig_shape = x.shape
    dtype = x.dtype

    n = x.size
    pad_to = _SUBLANES * _LANES  # (8, 128) tiling unit for the 2-D slab
    n_pad = (-n) % pad_to

    x_flat = x.reshape(-1)
    if n_pad:
        # Only pay the pad round-trip when the flat size is actually unaligned.
        x_flat = jnp.pad(x_flat, (0, n_pad))
    rows = x_flat.size // _LANES
    x2d = x_flat.reshape(rows, _LANES)

    # Fixed large row tile (1 MiB f32 blocks at tile_rows=2048); cdiv grid lets
    # Pallas mask the ragged last block instead of shrinking the tile.
    # VMEM footprint: in + out, double-buffered = 4 * 1 MiB = 4 MiB -> fits the
    # scoped-VMEM default on v5e (16 MiB), v6e and v7x (32 MiB).
    tr = min(tile_rows, rows)  # both are multiples of 8
    grid = (pl.cdiv(rows, tr),)

    gamma_arr = jnp.asarray(gamma, jnp.float32).reshape(1, 1)

    out2d = pl.pallas_call(
        _nonneg_sigmoid_kernel,
        out_shape=jax.ShapeDtypeStruct((rows, _LANES), dtype),
        grid_spec=pltpu.PrefetchScalarGridSpec(
            num_scalar_prefetch=0,
            grid=grid,
            in_specs=[
                # gamma: tiny SMEM-resident scalar, same block every step.
                pl.BlockSpec((1, 1), lambda i: (0, 0),
                             memory_space=pltpu.MemorySpace.SMEM),
                pl.BlockSpec((tr, _LANES), lambda i: (i, 0)),
            ],
            out_specs=pl.BlockSpec((tr, _LANES), lambda i: (i, 0)),
        ),
        compiler_params=pltpu.CompilerParams(
            # Elementwise & independent per block; lets v7x shard across its
            # 2 TensorCores (no-op on v5e/v6e single-TC chips).
            dimension_semantics=("parallel",),
        ),
    )(gamma_arr, x2d)

    out = out2d
    if n_pad:
        out = out.reshape(-1)[:n]
    return out.reshape(orig_shape)


if __name__ == "__main__":
    key = jax.random.PRNGKey(0)
    # Module __init__ only takes a scalar gamma; pick a deterministic value.
    gamma = 1.5
    # Small NCHW-style input consistent with typical usage.
    x = jax.random.normal(key, (2, 4, 16, 16), dtype=jnp.float32)

    y = jax.block_until_ready(nonnegative_sigmoid(x, gamma))

    # Reference check in plain JAX (original formulation).
    y_ref = 2.0 / (1.0 + jnp.exp(-gamma * x)) - 1.0
    assert y.shape == x.shape and y.dtype == x.dtype
    assert jnp.allclose(y, y_ref, atol=5e-6, rtol=5e-6)

    print("KERNEL_OK")
</pallas_src>

<mosaic_0001>
module attributes {stable_mosaic.version = 11 : i64} {
  func.func @_nonneg_sigmoid_kernel(%arg0: i32, %arg1: memref<1x1xf32, #tpu.memory_space<smem>>, %arg2: memref<16x128xf32, #tpu.memory_space<vmem>>, %arg3: memref<16x128xf32, #tpu.memory_space<vmem>>) attributes {dimension_semantics = [#tpu.dimension_semantics<parallel>], iteration_bounds = array<i64: 1>, scalar_prefetch = 0 : i64, scratch_operands = 0 : i64, tpu.core_type = #tpu.core_type<tc>, window_params = [{transform_indices = @transform_0, window_bounds = array<i64: 1, 1>}, {transform_indices = @transform_1, window_bounds = array<i64: 16, 128>}, {transform_indices = @transform_2, window_bounds = array<i64: 16, 128>}]} {
    %c0 = arith.constant 0 : index
    %c0_0 = arith.constant 0 : index
    %0 = memref.load %arg1[%c0, %c0_0] : memref<1x1xf32, #tpu.memory_space<smem>>
    %c0_1 = arith.constant 0 : index
    %c0_2 = arith.constant 0 : index
    %1 = vector.load %arg2[%c0_1, %c0_2] : memref<16x128xf32, #tpu.memory_space<vmem>>, vector<16x128xf32>
    %cst = arith.constant 5.000000e-01 : f32
    %2 = arith.mulf %cst, %0 : f32
    %3 = vector.broadcast %2 : f32 to vector<16x128xf32>
    %4 = arith.mulf %3, %1 : vector<16x128xf32>
    %5 = math.tanh %4 : vector<16x128xf32>
    %c0_3 = arith.constant 0 : index
    %c0_4 = arith.constant 0 : index
    %6 = vector.load %arg3[%c0_3, %c0_4] : memref<16x128xf32, #tpu.memory_space<vmem>>, vector<16x128xf32>
    tpu.vector_store %arg3[%c0_3, %c0_4], %5 {strides = array<i32>} : memref<16x128xf32, #tpu.memory_space<vmem>>, vector<16x128xf32>,
    return
  }
  func.func @transform_0(%arg0: i32) -> (i32, i32) {
    %c0_i32 = arith.constant 0 : i32
    %c0_i32_0 = arith.constant 0 : i32
    %c0_i32_1 = arith.constant 0 : i32
    return %c0_i32, %c0_i32_0 : i32, i32
  }
  func.func @transform_1(%arg0: i32) -> (i32, i32) {
    %c0_i32 = arith.constant 0 : i32
    %c0_i32_0 = arith.constant 0 : i32
    return %arg0, %c0_i32 : i32, i32
  }
  func.func @transform_2(%arg0: i32) -> (i32, i32) {
    %c0_i32 = arith.constant 0 : i32
    %c0_i32_0 = arith.constant 0 : i32
    return %arg0, %c0_i32 : i32, i32
  }
}

</mosaic_0001>

<bundles_post_ra>
// kernel: tpu_custom_call.1
= control target key start
LH: loop header
LB: loop body
LE: loop exit
PB: predicated region body
PF: predicated region fallthrough
CT: control target
= control target key end

     0   :  { %8 = vsyncpa [#allocation4], 0  ;;  %s163_s0 = inlined_call_operand.<no memory space> [shape: f32[1,1], index: 0, kind: input, shape index: {}]   ;;  %s164_s1 = inlined_call_operand.hbm [shape: f32[16,128], index: 1, kind: input, shape index: {}]   ;;  %s165_s2 = inlined_call_operand.hbm [shape: f32[16,128], index: 2, kind: output, shape index: {}]  }
   0x1   :  { %9 = vsyncpa [#allocation5], 0  ;;  %s111_s9 = smov [#allocation3]   ;;  %s63_s13 = scalar_lea.hbm %s164_s1, 256 }
   0x2   :  { %s17_s10 = sshll.u32 %s111_s9, 4  ;;  %p64_p0 = scmp.ne.s32.totalorder %s164_s1, %s63_s13  ;;  %s18_s10 = int_to_ptr.vmem [resolvable:$true] %s17_s10 }
   0x3   :  { %p67_p1 = scmp.lt.u32.totalorder %s63_s13, %s164_s1 }
   0x5   :  { %p69_p2 = pnand %p67_p1, %p64_p0 }
   0x7   :  { %72 = shalt.err (!%p69_p2)
}
   0x8   :  { %s73_s18 = scalar_lea.vmem %s18_s10, 256  ;;  %p78_p4 = scmp.lt.s32.totalorder %s18_s10, %s18_s10 }
   0x9   :  { %p74_p3 = scmp.ne.s32.totalorder %s18_s10, %s73_s18  ;;  %p79_p5 = scmp.lt.s32.totalorder %s73_s18, %s73_s18 }
   0xb   :  { %p80_p6 = por %p79_p5, %p78_p4 }
   0xd   :  { %p81_p7 = pnand %p80_p6, %p74_p3 }
   0xf   :  { %84 = shalt.err (!%p81_p7)
}
  0x10   :  { %s112_s19 = smov 128   ;;  %s113_s20 = smov 8  }
  0x11   :  { %23 = dma.hbm_to_vmem [thread:$0]  %s164_s1, 256, %s18_s10, [#allocation4], %s112_s19, %s112_s19, %s113_s20  }
  0x12   :  { %107 = dma.done.wait [#allocation4], 256  }
  0x13   :  { %108 = vsyncadd [#allocation4], 4294967040  ;;  %s30_s25 = smul.f32 0.5, %s163_s0  ;;  %v28_v1 = vld [vmem:[#allocation3] sm:$0xff]  ;;  %v29_v2 = vld [vmem:[#allocation3 + $0x8] sm:$0xff]  ;;  %s114_s26 = smov [#allocation6]  }
  0x14   :  { %s43_s27 = sshll.u32 %s114_s26, 4  ;;  %s44_s27 = int_to_ptr.vmem [resolvable:$true] %s43_s27 }
  0x15   :  { %v31_v0 = vstv %s30_s25  ;;  %s85_s1 = scalar_lea.vmem %s44_s27, 256  ;;  %p90_p9 = scmp.lt.s32.totalorder %s44_s27, %s44_s27 }
  0x16   :  { %v32_v3 = vmul.f32 %v31_v0, %v28_v1  ;;  %v33_v4 = vmul.f32 %v31_v0, %v29_v2  ;;  %p86_p8 = scmp.ne.s32.totalorder %s44_s27, %s85_s1  ;;  %p91_p10 = scmp.lt.s32.totalorder %s85_s1, %s85_s1 }
  0x18   :  { %59 = vtanh.f32 %v32_v3  ;;  %p92_p11 = por %p91_p10, %p90_p9 }
  0x19   :  { %61 = vtanh.f32 %v33_v4 }
  0x1a   :  { %p93_p12 = pnand %p92_p11, %p86_p8 }
  0x22   :  { %v60_v5 = vpop.eup %59 }
  0x23   :  { %v62_v6 = vpop.eup %61  ;;  %36 = vst [vmem:[#allocation6] sm:$0xff] %v60_v5 }
  0x24   :  { %37 = vst [vmem:[#allocation6 + $0x8] sm:$0xff] %v62_v6 }
  0x25   :  { %96 = shalt.err (!%p93_p12)
}
  0x26   :  { %s97_s29 = scalar_lea.hbm %s165_s2, 256 }
  0x27   :  { %p98_p13 = scmp.ne.s32.totalorder %s165_s2, %s97_s29  ;;  %p101_p0 = scmp.lt.u32.totalorder %s97_s29, %s165_s2 }
  0x29   :  { %p103_p1 = pnand %p101_p0, %p98_p13 }
  0x2b   :  { %106 = shalt.err (!%p103_p1)
}
  0x2c   :  { %49 = dma.vmem_to_hbm [thread:$0]  %s44_s27, 256, %s165_s2, [#allocation5], %s112_s19, %s112_s19, %s113_s20  }
  0x2d   :  { %109 = dma.done.wait [#allocation5], 256  }
  0x2e   :  { %110 = vsyncadd [#allocation5], 4294967040 }
  0x2f   :  { %53 = vsyncpa [#allocation4], 1 }
  0x30   :  { %54 = vsyncpa [#allocation5], 1 }

</bundles_post_ra>
